<compile_context>
chip_gen: v5e
topology: v5e:2x2
jax: 0.10.0
libtpu: 0.0.40
codegen_flags: <defaults>
</compile_context>

<pallas_src>
import functools

import numpy as np
import jax
import jax.numpy as jnp
from jax import lax
from jax.experimental import pallas as pl
from jax.experimental.pallas import tpu as pltpu


# ---------------------------------------------------------------------------
# Config (mirrors the SparseCHMMConfig fields used by DirParamBaseModule)
# ---------------------------------------------------------------------------
N_SRC = 4                      # number of labelling sources
N_LBS = 5                      # number of labels; d_obs == n_lbs
D_OBS = N_LBS
D_EMB = 32                     # embedding dim
DIAG_EXP_T1 = 2.0              # config.diag_exp_t1
DIAG_EXP_T2 = 3.0              # config.diag_exp_t2
NONDIAG_EXP = 2.0              # config.nondiag_exp
NONDIAG_SPLIT_RATIO = 0.5      # config.nondiag_split_ratio
NONDIAG_SPLIT_DECAY = 0.9      # config.nondiag_split_decay
RELIAB_LEVEL = "label"         # emission_2e out dim = n_src * (n_lbs - 1)


# ---------------------------------------------------------------------------
# Shared math helpers (used by both the kernel and the pure-JAX reference).
# TODO(synk): exact analytic forms of prob_scaling / entity_emiss_* are not
# part of the provided module source; reconstructed as continuous piecewise
# power functions with the same signatures/ranges (parity proven against the
# in-file reference only).
# ---------------------------------------------------------------------------
def _ipow(x, p):
    """x**p; small integer exponents strength-reduced to multiplies (keeps the
    EUP idle and avoids log(0) NaNs in dead where() branches)."""
    pf = float(p)
    if pf.is_integer() and 0.0 <= pf <= 4.0:
        n = int(pf)
        if n == 0:
            return jnp.ones_like(x)
        y = x
        for _ in range(n - 1):
            y = y * x
        return y
    # TODO(synk): non-integer exponent fallback; clamp keeps dead branch finite.
    return jnp.exp(p * jnp.log(jnp.maximum(x, 1e-30)))


def prob_scaling(x, r, e1, e2):
    """Piecewise power scaling, continuous at x == r, maps (0,1) -> (0,1)."""
    c1 = r ** (1.0 - e1)
    c2 = (1.0 - r) ** (1.0 - e2)
    left = c1 * _ipow(x, e1)
    right = 1.0 - c2 * _ipow(1.0 - x, e2)
    return jnp.where(x < r, left, right)


def entity_emiss_diag(x):
    return x


def _o_share(x, tp, exp_term):
    return 1.0 - prob_scaling(x, tp, exp_term, exp_term)


def entity_emiss_o(x, n_lbs, tp, exp_term):
    return (1.0 - x) * _o_share(x, tp, exp_term)


def entity_emiss_nondiag(x, n_lbs, tp, exp_term):
    return (1.0 - x) * (1.0 - _o_share(x, tp, exp_term)) / (n_lbs - 2)


# ---------------------------------------------------------------------------
# Static assembly constants (built once on host, resident in VMEM).
#   conc-lane layout (width n_conc = n_src*d_obs = 20):
#     lanes [0, 16)  : conc_l2l flat (src-major, label-minor)
#     lanes [16, 20) : conc_o2o (one per source)
#   output-lane layout (width out_w = 128):
#     lanes [0, 100)   : dirichlet params, flat (src, row, col)
#     lanes [100, 116) : conc_l2l passthrough
#     lanes [116, 120) : conc_o2o passthrough
#     lanes [120, 128) : zero padding
# ---------------------------------------------------------------------------
@functools.lru_cache(maxsize=None)
def _assembly_constants(n_src, d_obs, out_w):
    lm1 = d_obs - 1
    n_l2l = n_src * lm1
    n_conc = n_l2l + n_src
    n_dp = n_src * d_obs * d_obs

    # grouped-softmax / sigmoid denominator matrix + o-lane marker row
    g = np.zeros((n_conc, n_conc), np.float32)
    for j in range(n_l2l):
        for k in range(n_l2l):
            if k % lm1 == j % lm1:
                g[k, j] = 1.0                     # sum over sources, same label
    for j in range(n_l2l, n_conc):
        g[j, j] = 1.0                             # sigmoid: denom gets p itself
    oneg = np.full((1, n_conc), -1e30, np.float32)
    oneg[0, n_l2l:] = 0.0                         # exp(oneg - mx): o lanes get exp(-mx)
    gso = np.concatenate([g, oneg], axis=0)       # [n_conc + 1, n_conc]

    # expansion matrix (conc lanes -> output lanes) + per-lane select constants
    e = np.zeros((n_conc, out_w), np.float32)
    m_keep = np.zeros((1, out_w), np.float32)
    c_const = np.zeros((1, out_w), np.float32)
    c_ps = np.zeros((1, out_w), np.float32)
    for f in range(n_dp):
        s, rem = divmod(f, d_obs * d_obs)
        row, col = divmod(rem, d_obs)
        if row == 0:
            e[n_l2l + s, f] = 1.0                 # base = conc_o2o[s]
            if col == 0:
                m_keep[0, f] = 1.0                # dp = conc_o2o
            else:
                c_const[0, f] = 1.0 / (d_obs - 1)  # dp = (1-o2o)/(d_obs-1)
        else:
            e[s * lm1 + row - 1, f] = 1.0         # base = conc_l2l[s, row-1]
            if col == 0:
                c_const[0, f] = 1.0               # dp = (1-x)*(1-ps)  (emiss_o)
                c_ps[0, f] = -1.0
            elif col == row:
                m_keep[0, f] = 1.0                # dp = x             (diag)
            else:
                c_ps[0, f] = 1.0 / (d_obs - 2)    # dp = (1-x)*ps/(d_obs-2)
    for k in range(n_l2l):                        # conc_l2l passthrough lanes
        e[k, n_dp + k] = 1.0
        m_keep[0, n_dp + k] = 1.0
    for s in range(n_src):                        # conc_o2o passthrough lanes
        e[n_l2l + s, n_dp + n_l2l + s] = 1.0
        m_keep[0, n_dp + n_l2l + s] = 1.0
    # lanes >= n_dp + n_conc: all-zero expansion columns & constants -> output 0
    elc = np.concatenate([e, m_keep, c_const, c_ps], axis=0)   # [n_conc + 3, out_w]
    return gso, elc


# ---------------------------------------------------------------------------
# Pallas kernel: one grid step == TB batch rows, one 128-lane-dense store
# ---------------------------------------------------------------------------
def _dir_param_kernel(x_ref, wb_ref, gso_ref, elc_ref, out_ref, *,
                      d_emb, n_src, d_obs, split_point,
                      ent_exp1, ent_exp2, nondiag_exp):
    n_conc = n_src * d_obs                       # 16 e-lanes + 4 o-lanes
    prec = lax.Precision.HIGHEST                 # match f32 reference numerics

    x = x_ref[...]                               # [TB, d_emb]
    w = wb_ref[0:d_emb, :]                       # [d_emb, n_conc]  (we | wo)
    b = wb_ref[d_emb:d_emb + 1, :]               # [1, n_conc]      (be | bo)
    logits = jnp.dot(x, w, precision=prec,
                     preferred_element_type=jnp.float32) + b

    # Grouped source-softmax (e lanes) and sigmoid (o lanes) in ONE pass:
    #   p     = exp(logits - rowmax)
    #   denom = p @ G              (per-label source sum; identity on o lanes)
    #           + exp(oneg - mx)   (adds exp(-rowmax) on o lanes only)
    #   conc  = p / denom
    g = gso_ref[0:n_conc, :]                     # [n_conc, n_conc] 0/1
    oneg = gso_ref[n_conc:n_conc + 1, :]         # 0 on o lanes, -1e30 on e lanes
    mx = jnp.max(logits, axis=-1, keepdims=True)           # XLU
    p = jnp.exp(logits - mx)                                # EUP
    denom = jnp.dot(p, g, precision=prec,
                    preferred_element_type=jnp.float32) + jnp.exp(oneg - mx)
    conc = p / denom

    # prob_scaling only on the e lanes (o lanes keep the sigmoid value)
    scaled = prob_scaling(conc, 1.0 / n_src, ent_exp1, ent_exp2)
    conc = jnp.where(oneg < -1.0, scaled, conc)             # [TB, n_conc]

    # Scatter conc onto the flat (src,row,col) + passthrough lane layout (MXU).
    e_all = elc_ref[0:n_conc, :]                             # [n_conc, out_w] 0/1
    base = jnp.dot(conc, e_all, precision=prec,
                   preferred_element_type=jnp.float32)       # [TB, out_w]

    # Host-precomputed per-lane constants (no iota / div / mod in-kernel):
    #   out = m_keep*base + (1-base)*(c_const + ps*c_ps)
    m_keep = elc_ref[n_conc:n_conc + 1, :]
    c_const = elc_ref[n_conc + 1:n_conc + 2, :]
    c_ps = elc_ref[n_conc + 2:n_conc + 3, :]
    ps = prob_scaling(base, split_point, nondiag_exp, nondiag_exp)
    # TODO(synk): the torch code .detach()es the nondiag term; forward-only here.
    out_ref[...] = (m_keep * base
                    + (1.0 - base) * (c_const + ps * c_ps)).astype(out_ref.dtype)


# ---------------------------------------------------------------------------
# Wrapper
# ---------------------------------------------------------------------------
def _pick_batch_tile(b):
    """Rows per grid step: multiple of 8 (or the full batch when b <= 8),
    large enough to amortise the ~0.35us per-step overhead, and giving >= 2
    grid steps whenever possible so both of v7x's TensorCores get work.
    Capped at 1024 rows (a [1024,128] f32 slab is ~0.5 MiB, far below VMEM)."""
    if b <= 8:
        return b                    # single full-batch block (no ragged rows)
    if b <= 16:
        return 8
    half = -(-b // 2)               # aim for >= 2 steps
    return min(1024, -(-half // 8) * 8)


@functools.partial(jax.jit,
                   static_argnames=("apply_ratio_decay", "out_dtype",
                                    "return_slab"))
def dir_param_forward(embs, wo, bo, we, be, apply_ratio_decay=False,
                      out_dtype=jnp.float32, return_slab=False):
    b, _, d_emb = embs.shape
    n_src, d_obs = N_SRC, D_OBS
    lm1 = d_obs - 1
    n_dp = n_src * d_obs * d_obs
    n_l2l = n_src * lm1
    n_conc = n_l2l + n_src
    out_w = -(-(n_dp + n_conc) // 128) * 128     # lane-dense slab width (128)

    if not apply_ratio_decay:
        split_point = NONDIAG_SPLIT_RATIO / d_obs
    else:
        split_point = NONDIAG_SPLIT_RATIO * NONDIAG_SPLIT_DECAY / d_obs

    gso_np, elc_np = _assembly_constants(n_src, d_obs, out_w)
    gso = jnp.asarray(gso_np)
    elc = jnp.asarray(elc_np)

    # Fused parameter slab: columns [we | wo] match the kernel's conc-lane
    # layout (e lanes first, then o lanes); bias appended as the last row.
    wb = jnp.concatenate(
        [jnp.concatenate([we, wo], axis=1),
         jnp.concatenate([be, bo], axis=1)], axis=0)         # [d_emb+1, n_conc]

    # seq-0 selection stays in the wrapper (tiny strided slice); a
    # (tb, 1, d_emb) block would need a non-8-aligned second-minor block dim.
    x0 = embs[:, 0, :]                                       # [B, d_emb]

    tb = _pick_batch_tile(b)
    grid = -(-b // tb)      # ragged last block is masked by Pallas (no pad / out[:b])

    kernel = functools.partial(
        _dir_param_kernel, d_emb=d_emb, n_src=n_src, d_obs=d_obs,
        split_point=split_point, ent_exp1=DIAG_EXP_T1, ent_exp2=DIAG_EXP_T2,
        nondiag_exp=NONDIAG_EXP)

    const = lambda i: (0, 0)
    cost = pl.CostEstimate(
        flops=2 * b * n_conc * (d_emb + n_conc + out_w) + 40 * b * out_w,
        transcendentals=2 * b * n_conc,
        bytes_accessed=4 * (b * (d_emb + out_w) + wb.size + gso.size + elc.size))

    out = pl.pallas_call(
        kernel,
        out_shape=jax.ShapeDtypeStruct((b, out_w), out_dtype),
        grid_spec=pltpu.PrefetchScalarGridSpec(
            num_scalar_prefetch=0,
            grid=(grid,),
            in_specs=[
                pl.BlockSpec((tb, d_emb), lambda i: (i, 0)),     # x0 batch tile
                pl.BlockSpec((d_emb + 1, n_conc), const),        # fused W | bias
                pl.BlockSpec((n_conc + 1, n_conc), const),       # group-sum + o marker
                pl.BlockSpec((n_conc + 3, out_w), const),        # expansion + lane consts
            ],
            out_specs=pl.BlockSpec((tb, out_w), lambda i: (i, 0)),
        ),
        compiler_params=pltpu.CompilerParams(
            dimension_semantics=("parallel",)),
        cost_estimate=cost,
    )(x0, wb, gso, elc)

    if return_slab:
        # Downstream consumers that can read the lane-dense slab directly avoid
        # the extra HBM pass of the slices/reshapes below.
        return out

    dp = out[:, :n_dp].reshape(b, n_src, d_obs, d_obs)
    conc_l2l = out[:, n_dp:n_dp + n_l2l].reshape(b, n_src, lm1)
    conc_o2o = out[:, n_dp + n_l2l:n_dp + n_conc]
    return dp, (conc_o2o, conc_l2l)


# ---------------------------------------------------------------------------
# Pure-JAX reference (follows the torch code line by line)
# ---------------------------------------------------------------------------
def dir_param_reference(embs, wo, bo, we, be, apply_ratio_decay=False):
    b = embs.shape[0]
    n_src, d_obs = N_SRC, D_OBS
    lm1 = d_obs - 1
    x0 = embs[:, 0, :]

    conc_o2o = jax.nn.sigmoid(
        jnp.dot(x0, wo, precision=lax.Precision.HIGHEST) + bo[0])

    dp = jnp.full((b, n_src, d_obs, d_obs), 1e-9, jnp.float32)
    dp = dp.at[:, :, 0, 0].set(conc_o2o)
    dp = dp.at[:, :, 0, 1:].set(((1.0 - conc_o2o) / (d_obs - 1))[..., None])

    conc_e2e = (jnp.dot(x0, we, precision=lax.Precision.HIGHEST) + be[0]
                ).reshape(b, n_src, lm1)
    conc_e2e_norm = jax.nn.softmax(conc_e2e, axis=-2)
    conc_l2l = prob_scaling(conc_e2e_norm, 1.0 / n_src, DIAG_EXP_T1, DIAG_EXP_T2)

    diag_v = entity_emiss_diag(conc_l2l)
    for i in range(1, d_obs):
        dp = dp.at[:, :, i, i].set(diag_v[:, :, i - 1])

    if not apply_ratio_decay:
        split_point = NONDIAG_SPLIT_RATIO / d_obs
    else:
        split_point = NONDIAG_SPLIT_RATIO * NONDIAG_SPLIT_DECAY / d_obs

    nond_v = entity_emiss_nondiag(conc_l2l, d_obs, split_point, NONDIAG_EXP)
    for i in range(1, d_obs):
        for j in range(1, d_obs):
            if i != j:
                dp = dp.at[:, :, i, j].set(nond_v[:, :, i - 1])

    o_v = entity_emiss_o(conc_l2l, d_obs, split_point, NONDIAG_EXP)
    dp = dp.at[:, :, 1:, 0].set(o_v)
    return dp, (conc_o2o, conc_l2l)


# ---------------------------------------------------------------------------
# Main
# ---------------------------------------------------------------------------
if __name__ == "__main__":
    key = jax.random.PRNGKey(0)
    k_emb, k_wo, k_bo, k_we, k_be, k_emb2 = jax.random.split(key, 6)

    lm1 = D_OBS - 1
    d_out_e = N_SRC * lm1

    # xavier_uniform weights (stored as [in, out]); torch-default uniform bias
    bound_o = (6.0 / (D_EMB + N_SRC)) ** 0.5
    wo = jax.random.uniform(k_wo, (D_EMB, N_SRC), jnp.float32, -bound_o, bound_o)
    bound_e = (6.0 / (D_EMB + d_out_e)) ** 0.5
    we = jax.random.uniform(k_we, (D_EMB, d_out_e), jnp.float32, -bound_e, bound_e)
    bb = 1.0 / (D_EMB ** 0.5)
    bo = jax.random.uniform(k_bo, (1, N_SRC), jnp.float32, -bb, bb)
    be = jax.random.uniform(k_be, (1, d_out_e), jnp.float32, -bb, bb)

    def check(embs):
        dp, (o2o, l2l) = dir_param_forward(embs, wo, bo, we, be)
        jax.block_until_ready(dp)
        dp_r, (o2o_r, l2l_r) = dir_param_reference(embs, wo, bo, we, be)
        bsz = embs.shape[0]
        assert dp.shape == (bsz, N_SRC, D_OBS, D_OBS)
        assert o2o.shape == (bsz, N_SRC)
        assert l2l.shape == (bsz, N_SRC, D_OBS - 1)
        ok = (jnp.allclose(dp, dp_r, atol=1e-4, rtol=1e-4)
              and jnp.allclose(o2o, o2o_r, atol=1e-4, rtol=1e-4)
              and jnp.allclose(l2l, l2l_r, atol=1e-4, rtol=1e-4))
        if not bool(ok):
            raise AssertionError("Pallas kernel does not match JAX reference")

    # small case: batch=2, seq=8, hidden=32 (single full-batch block)
    check(jax.random.normal(k_emb, (2, 8, D_EMB), dtype=jnp.float32))
    # multi-step + ragged-last-block case: batch=20 -> tile 16, grid of 2
    check(jax.random.normal(k_emb2, (20, 8, D_EMB), dtype=jnp.float32))

    print("KERNEL_OK")
</pallas_src>

<mosaic_0001>
module attributes {stable_mosaic.version = 11 : i64} {
  func.func @_dir_param_kernel(%arg0: i32, %arg1: memref<2x32xf32, #tpu.memory_space<vmem>>, %arg2: memref<33x20xf32, #tpu.memory_space<vmem>>, %arg3: memref<21x20xf32, #tpu.memory_space<vmem>>, %arg4: memref<23x128xf32, #tpu.memory_space<vmem>>, %arg5: memref<2x128xf32, #tpu.memory_space<vmem>>) attributes {dimension_semantics = [#tpu.dimension_semantics<parallel>], iteration_bounds = array<i64: 1>, scalar_prefetch = 0 : i64, scratch_operands = 0 : i64, tpu.core_type = #tpu.core_type<tc>, window_params = [{transform_indices = @transform_0, window_bounds = array<i64: 2, 32>}, {pipeline_mode = #tpu.pipeline_mode<synchronous>, transform_indices = @transform_1, window_bounds = array<i64: 33, 20>}, {pipeline_mode = #tpu.pipeline_mode<synchronous>, transform_indices = @transform_2, window_bounds = array<i64: 21, 20>}, {pipeline_mode = #tpu.pipeline_mode<synchronous>, transform_indices = @transform_3, window_bounds = array<i64: 23, 128>}, {transform_indices = @transform_4, window_bounds = array<i64: 2, 128>}]} {
    %c0 = arith.constant 0 : index
    %c0_0 = arith.constant 0 : index
    %0 = vector.load %arg1[%c0, %c0_0] : memref<2x32xf32, #tpu.memory_space<vmem>>, vector<2x32xf32>
    %c0_1 = arith.constant 0 : index
    %c0_2 = arith.constant 0 : index
    %1 = vector.load %arg2[%c0_1, %c0_2] : memref<33x20xf32, #tpu.memory_space<vmem>>, vector<32x20xf32>
    %c32 = arith.constant 32 : index
    %c0_3 = arith.constant 0 : index
    %2 = vector.load %arg2[%c32, %c0_3] : memref<33x20xf32, #tpu.memory_space<vmem>>, vector<1x20xf32>
    %cst = arith.constant dense<0.000000e+00> : vector<2x20xf32>
    %3 = tpu.matmul %0, %1, %cst {dimension_numbers = #tpu.dot_dimension_numbers<[1], [0], [0], [1], [0, 0, 1, 1], [], []>, precision = #tpu.contract_precision<fp32>} : vector<2x32xf32>, vector<32x20xf32>, vector<2x20xf32> -> vector<2x20xf32>
    %4 = vector.broadcast %2 : vector<1x20xf32> to vector<2x20xf32>
    %5 = arith.addf %3, %4 : vector<2x20xf32>
    %c0_4 = arith.constant 0 : index
    %c0_5 = arith.constant 0 : index
    %6 = vector.load %arg3[%c0_4, %c0_5] : memref<21x20xf32, #tpu.memory_space<vmem>>, vector<20x20xf32>
    %c20 = arith.constant 20 : index
    %c0_6 = arith.constant 0 : index
    %7 = vector.load %arg3[%c20, %c0_6] : memref<21x20xf32, #tpu.memory_space<vmem>>, vector<1x20xf32>
    %cst_7 = arith.constant dense<0xFF800000> : vector<2xf32>
    %8 = vector.multi_reduction <maximumf>, %5, %cst_7 [1] : vector<2x20xf32> to vector<2xf32>
    %9 = vector.shape_cast %8 : vector<2xf32> to vector<2x1xf32>
    %10 = vector.broadcast %9 : vector<2x1xf32> to vector<2x20xf32>
    %11 = arith.subf %5, %10 : vector<2x20xf32>
    %12 = math.exp %11 : vector<2x20xf32>
    %cst_8 = arith.constant dense<0.000000e+00> : vector<2x20xf32>
    %13 = tpu.matmul %12, %6, %cst_8 {dimension_numbers = #tpu.dot_dimension_numbers<[1], [0], [0], [1], [0, 0, 1, 1], [], []>, precision = #tpu.contract_precision<fp32>} : vector<2x20xf32>, vector<20x20xf32>, vector<2x20xf32> -> vector<2x20xf32>
    %14 = vector.broadcast %7 : vector<1x20xf32> to vector<2x20xf32>
    %15 = vector.broadcast %9 : vector<2x1xf32> to vector<2x20xf32>
    %16 = arith.subf %14, %15 : vector<2x20xf32>
    %17 = math.exp %16 : vector<2x20xf32>
    %18 = arith.addf %13, %17 : vector<2x20xf32>
    %19 = arith.divf %12, %18 : vector<2x20xf32>
    %20 = arith.mulf %19, %19 : vector<2x20xf32>
    %cst_9 = arith.constant 4.000000e+00 : f32
    %21 = vector.broadcast %cst_9 : f32 to vector<2x20xf32>
    %22 = arith.mulf %21, %20 : vector<2x20xf32>
    %cst_10 = arith.constant 1.000000e+00 : f32
    %23 = vector.broadcast %cst_10 : f32 to vector<2x20xf32>
    %24 = arith.subf %23, %19 : vector<2x20xf32>
    %25 = arith.mulf %24, %24 : vector<2x20xf32>
    %26 = arith.mulf %25, %24 : vector<2x20xf32>
    %cst_11 = arith.constant 1.77777779 : f32
    %27 = vector.broadcast %cst_11 : f32 to vector<2x20xf32>
    %28 = arith.mulf %27, %26 : vector<2x20xf32>
    %cst_12 = arith.constant 1.000000e+00 : f32
    %29 = vector.broadcast %cst_12 : f32 to vector<2x20xf32>
    %30 = arith.subf %29, %28 : vector<2x20xf32>
    %cst_13 = arith.constant 2.500000e-01 : f32
    %31 = vector.broadcast %cst_13 : f32 to vector<2x20xf32>
    %32 = arith.cmpf olt, %19, %31 : vector<2x20xf32>
    %33 = arith.select %32, %22, %30 : vector<2x20xi1>, vector<2x20xf32>
    %cst_14 = arith.constant -1.000000e+00 : f32
    %34 = vector.broadcast %cst_14 : f32 to vector<1x20xf32>
    %35 = arith.cmpf olt, %7, %34 : vector<1x20xf32>
    %36 = vector.shape_cast %35 : vector<1x20xi1> to vector<1x20xi1>
    %37 = vector.broadcast %36 : vector<1x20xi1> to vector<2x20xi1>
    %38 = arith.select %37, %33, %19 : vector<2x20xi1>, vector<2x20xf32>
    %c0_15 = arith.constant 0 : index
    %c0_16 = arith.constant 0 : index
    %39 = vector.load %arg4[%c0_15, %c0_16] : memref<23x128xf32, #tpu.memory_space<vmem>>, vector<20x128xf32>
    %cst_17 = arith.constant dense<0.000000e+00> : vector<2x128xf32>
    %40 = tpu.matmul %38, %39, %cst_17 {dimension_numbers = #tpu.dot_dimension_numbers<[1], [0], [0], [1], [0, 0, 1, 1], [], []>, precision = #tpu.contract_precision<fp32>} : vector<2x20xf32>, vector<20x128xf32>, vector<2x128xf32> -> vector<2x128xf32>
    %c20_18 = arith.constant 20 : index
    %c0_19 = arith.constant 0 : index
    %41 = vector.load %arg4[%c20_18, %c0_19] : memref<23x128xf32, #tpu.memory_space<vmem>>, vector<1x128xf32>
    %c21 = arith.constant 21 : index
    %c0_20 = arith.constant 0 : index
    %42 = vector.load %arg4[%c21, %c0_20] : memref<23x128xf32, #tpu.memory_space<vmem>>, vector<1x128xf32>
    %c22 = arith.constant 22 : index
    %c0_21 = arith.constant 0 : index
    %43 = vector.load %arg4[%c22, %c0_21] : memref<23x128xf32, #tpu.memory_space<vmem>>, vector<1x128xf32>
    %44 = arith.mulf %40, %40 : vector<2x128xf32>
    %cst_22 = arith.constant 1.000000e+01 : f32
    %45 = vector.broadcast %cst_22 : f32 to vector<2x128xf32>
    %46 = arith.mulf %45, %44 : vector<2x128xf32>
    %cst_23 = arith.constant 1.000000e+00 : f32
    %47 = vector.broadcast %cst_23 : f32 to vector<2x128xf32>
    %48 = arith.subf %47, %40 : vector<2x128xf32>
    %49 = arith.mulf %48, %48 : vector<2x128xf32>
    %cst_24 = arith.constant 1.11111116 : f32
    %50 = vector.broadcast %cst_24 : f32 to vector<2x128xf32>
    %51 = arith.mulf %50, %49 : vector<2x128xf32>
    %cst_25 = arith.constant 1.000000e+00 : f32
    %52 = vector.broadcast %cst_25 : f32 to vector<2x128xf32>
    %53 = arith.subf %52, %51 : vector<2x128xf32>
    %cst_26 = arith.constant 1.000000e-01 : f32
    %54 = vector.broadcast %cst_26 : f32 to vector<2x128xf32>
    %55 = arith.cmpf olt, %40, %54 : vector<2x128xf32>
    %56 = arith.select %55, %46, %53 : vector<2x128xi1>, vector<2x128xf32>
    %57 = vector.broadcast %41 : vector<1x128xf32> to vector<2x128xf32>
    %58 = arith.mulf %57, %40 : vector<2x128xf32>
    %cst_27 = arith.constant 1.000000e+00 : f32
    %59 = vector.broadcast %cst_27 : f32 to vector<2x128xf32>
    %60 = arith.subf %59, %40 : vector<2x128xf32>
    %61 = vector.broadcast %43 : vector<1x128xf32> to vector<2x128xf32>
    %62 = arith.mulf %56, %61 : vector<2x128xf32>
    %63 = vector.broadcast %42 : vector<1x128xf32> to vector<2x128xf32>
    %64 = arith.addf %63, %62 : vector<2x128xf32>
    %65 = arith.mulf %60, %64 : vector<2x128xf32>
    %66 = arith.addf %58, %65 : vector<2x128xf32>
    %c0_28 = arith.constant 0 : index
    %c0_29 = arith.constant 0 : index
    %67 = vector.load %arg5[%c0_28, %c0_29] : memref<2x128xf32, #tpu.memory_space<vmem>>, vector<2x128xf32>
    tpu.vector_store %arg5[%c0_28, %c0_29], %66 {strides = array<i32>} : memref<2x128xf32, #tpu.memory_space<vmem>>, vector<2x128xf32>,
    return
  }
  func.func @transform_0(%arg0: i32) -> (i32, i32) {
    %c0_i32 = arith.constant 0 : i32
    %c0_i32_0 = arith.constant 0 : i32
    return %arg0, %c0_i32 : i32, i32
  }
  func.func @transform_1(%arg0: i32) -> (i32, i32) {
    %c0_i32 = arith.constant 0 : i32
    %c0_i32_0 = arith.constant 0 : i32
    %c0_i32_1 = arith.constant 0 : i32
    return %c0_i32, %c0_i32_0 : i32, i32
  }
  func.func @transform_2(%arg0: i32) -> (i32, i32) {
    %c0_i32 = arith.constant 0 : i32
    %c0_i32_0 = arith.constant 0 : i32
    %c0_i32_1 = arith.constant 0 : i32
    return %c0_i32, %c0_i32_0 : i32, i32
  }
  func.func @transform_3(%arg0: i32) -> (i32, i32) {
    %c0_i32 = arith.constant 0 : i32
    %c0_i32_0 = arith.constant 0 : i32
    %c0_i32_1 = arith.constant 0 : i32
    return %c0_i32, %c0_i32_0 : i32, i32
  }
  func.func @transform_4(%arg0: i32) -> (i32, i32) {
    %c0_i32 = arith.constant 0 : i32
    %c0_i32_0 = arith.constant 0 : i32
    return %arg0, %c0_i32 : i32, i32
  }
}

</mosaic_0001>

<bundles_post_ra>
// kernel: dir_param_forward.1
= control target key start
LH: loop header
LB: loop body
LE: loop exit
PB: predicated region body
PF: predicated region fallthrough
CT: control target
= control target key end

     0   :  { %vm24_vm0 = vcmask 261120   ;;  %vm217_vm1 = vcmask 156672   ;;  %vm232_vm2 = vcmask 1043456   ;;  %vm228_vm3 = vcmask 162816   ;;  %s748_s1 = inlined_call_operand.vmem [shape: f32[33,20], index: 1, kind: input, shape index: {}]   ;;  %s749_s0 = inlined_call_operand.vmem [shape: f32[2,32], index: 0, kind: input, shape index: {}]   ;;  %s750_s3 = inlined_call_operand.vmem [shape: f32[23,128], index: 3, kind: input, shape index: {}]   ;;  %s751_s2 = inlined_call_operand.vmem [shape: f32[21,20], index: 2, kind: input, shape index: {}]   ;;  %s752_s4 = inlined_call_operand.vmem [shape: f32[2,128], index: 4, kind: output, shape index: {}]  }
   0x1   :  { %v21_v0 = vld [vmem:[%s748_s1 + $0x18] sm:$0xff]  ;;  %v20_v1 = vld [vmem:[%s748_s1 + $0x10] sm:$0xff]  ;;  %v19_v2 = vld [vmem:[%s748_s1 + $0x8] sm:$0xff] }
   0x2   :  { %v40_v3 = vand.u32 4294901760, %v21_v0  ;;  %v42_v4 = vand.u32 4294901760, %v20_v1  ;;  %v44_v5 = vand.u32 4294901760, %v19_v2  ;;  %v18_v6 = vld [vmem:[%s748_s1] sm:$0xff]  ;;  %v215_v45 = vld [vmem:[%s751_s2 + $0x10] sm:$0xf] }
   0x3   :  { %v17_v7 = vld [vmem:[%s749_s0] sm:$0x3]  ;;  %v46_v8 = vand.u32 4294901760, %v18_v6  ;;  %v234_v46 = vsel %vm232_vm2, %v215_v45, 0  ;;  %v214_v48 = vld [vmem:[%s751_s2 + $0x8] sm:$0xff] }
   0x4   :  { %v26_v9 = vsel %vm24_vm0, %v17_v7, 0  ;;  %v70_v10 = vsub.f32 %v21_v0, %v40_v3  ;;  %41 = vmatpush.msra.mxu0 %v40_v3  ;;  %v76_v11 = vsub.f32 %v20_v1, %v42_v4  ;;  %141 = vmatpush.msra.mxu3 %v40_v3  ;;  %v82_v12 = vsub.f32 %v19_v2, %v44_v5  ;;  %v643_v31 = vld [vmem:[%s748_s1 + $0x20] ss:$0 sm:$0xff]  ;;  %v439_v55 = vld [vmem:[%s750_s3 + $0x10] sm:$0xf] }
   0x5   :  { %v48_v13 = vand.u32 4294901760, %v26_v9  ;;  %v88_v14 = vsub.f32 %v18_v6, %v46_v8  ;;  %v249_v47 = vand.u32 4294901760, %v234_v46  ;;  %v251_v50 = vand.u32 4294901760, %v214_v48  ;;  %v213_v51 = vld [vmem:[%s751_s2] sm:$0xff] }
   0x6   :  { %112 = vmatpush.msra.mxu2 %v70_v10  ;;  %43 = vmatpush.msra.mxu0 %v42_v4  ;;  %v71_v15 = vand.u32 4294901760, %v70_v10  ;;  %v77_v16 = vand.u32 4294901760, %v76_v11  ;;  %v83_v18 = vand.u32 4294901760, %v82_v12  ;;  %v253_v54 = vand.u32 4294901760, %v213_v51 }
   0x7   :  { %v49_v17 = vsub.f32 %v26_v9, %v48_v13  ;;  %143 = vmatpush.msra.mxu3 %v42_v4  ;;  %v89_v19 = vand.u32 4294901760, %v88_v14  ;;  %v278_v49 = vsub.f32 %v234_v46, %v249_v47  ;;  %v284_v53 = vsub.f32 %v214_v48, %v251_v50 }
   0x8   :  { %115 = vmatpush.msra.mxu2 %v76_v11  ;;  %v72_v20 = vsub.f32 %v70_v10, %v71_v15  ;;  %45 = vmatpush.msra.mxu0 %v44_v5  ;;  %v78_v21 = vsub.f32 %v76_v11, %v77_v16  ;;  %v84_v22 = vsub.f32 %v82_v12, %v83_v18  ;;  %v444_v57 = vsel %vm232_vm2, %v439_v55, 0 }
   0x9   :  { %v50_v23 = vand.u32 4294901760, %v49_v17  ;;  %145 = vmatpush.msra.mxu3 %v44_v5  ;;  %v90_v27 = vsub.f32 %v88_v14, %v89_v19  ;;  %v279_v52 = vand.u32 4294901760, %v278_v49  ;;  %v285_v58 = vand.u32 4294901760, %v284_v53 }
   0xa   :  { %v73_v24 = vand.u32 4294901760, %v72_v20  ;;  %118 = vmatpush.msra.mxu2 %v82_v12  ;;  %v79_v25 = vand.u32 4294901760, %v78_v21  ;;  %47 = vmatpush.msra.mxu0 %v46_v8  ;;  %v85_v28 = vand.u32 4294901760, %v84_v22  ;;  %v290_v59 = vsub.f32 %v213_v51, %v253_v54 }
   0xb   :  { %v51_v26 = vsub.f32 %v49_v17, %v50_v23  ;;  %147 = vmatpush.msra.mxu3 %v46_v8  ;;  %v91_v30 = vand.u32 4294901760, %v90_v27  ;;  %v280_v56 = vsub.f32 %v278_v49, %v279_v52  ;;  %v286_v61 = vsub.f32 %v284_v53, %v285_v58 }
   0xc   :  { %170 = vmatpush.msrb.mxu0 %v71_v15  ;;  %74 = vmatpush.msra.mxu1 %v73_v24  ;;  %v712_v62 = vand.u32 4294901760, %v444_v57  ;;  %v291_v63 = vand.u32 4294901760, %v290_v59 }
   0xd   :  { %121 = vmatpush.msra.mxu2 %v88_v14  ;;  %v52_v29 = vand.u32 4294901760, %v51_v26  ;;  %151 = vmatmul.f32.vlgmr.msra.gmra.mxu3 %v50_v23  ;;  %v281_v60 = vand.u32 4294901760, %v280_v56  ;;  %v287_v0 = vand.u32 4294901760, %v286_v61  ;;  %v644_v14 = vld [vmem:[%s751_s2 + $0x14] ss:$0 sm:$0xff] }
   0xe   :  { %124 = vmatmul.f32.vlgmr.msra.gmra.mxu2 %v49_v17  ;;  %80 = vmatpush.msra.mxu1 %v79_v25  ;;  %v292_v1 = vsub.f32 %v290_v59, %v291_v63 }
   0xf   :  { %53 = vmatmul.f32.vlgmr.msra.gmra.mxu0 %v52_v29  ;;  %250 = vmatpush.msrb.mxu2 %v249_v47 }
  0x10   :  { %174 = vmatpush.msrb.mxu0 %v77_v16  ;;  %86 = vmatpush.msra.mxu1 %v85_v28  ;;  %v293_v2 = vand.u32 4294901760, %v292_v1 }
  0x11   :  { %252 = vmatpush.msrb.mxu2 %v251_v50  ;;  %282 = vmatpush.msrb.mxu3 %v281_v60 }
  0x12   :  { %178 = vmatpush.msrb.mxu0 %v83_v18  ;;  %92 = vmatpush.msra.mxu1 %v91_v30  ;;  %v438_v18 = vld [vmem:[%s750_s3 + $0x8] sm:$0xff] }
  0x13   :  { %94 = vmatmul.f32.vlgmr.msra.gmra.mxu1 %v48_v13  ;;  %254 = vmatpush.msrb.mxu2 %v253_v54  ;;  %v461_v20 = vand.u32 4294901760, %v438_v18 }
  0x14   :  { %182 = vmatpush.msrb.mxu0 %v89_v19  ;;  %201 = vmatpush.msrb.mxu1 %v40_v3  ;;  %v437_v19 = vld [vmem:[%s750_s3] sm:$0xff] }
  0x15   :  { %370 = vmatpush.msra.mxu2 %v279_v52  ;;  %288 = vmatpush.msrb.mxu3 %v287_v0  ;;  %v463_v21 = vand.u32 4294901760, %v437_v19  ;;  %v494_v26 = vsub.f32 %v438_v18, %v461_v20  ;;  %v216_v52 = vld [vmem:[%s751_s2 + $0x14] sm:$0x1] }
  0x16   :  { %203 = vmatpush.msrb.mxu1 %v42_v4  ;;  %315 = vmatpush.msra.mxu0 %v278_v49  ;;  %vm432_vm8 = vcmp.lt.f32.partialorder %v216_v52, -1.0 }
  0x17   :  { %184 = vmatmul.f32.vlgmr.msrb.gmra.mxu0 %v48_v13  ;;  %374 = vmatpush.msra.mxu2 %v285_v58  ;;  %v500_v27 = vsub.f32 %v437_v19, %v463_v21  ;;  %v495_v30 = vand.u32 4294901760, %v494_v26  ;;  %v654_v58 = vmov 0  }
  0x18   :  { %205 = vmatpush.msrb.mxu1 %v44_v5  ;;  %318 = vmatpush.msra.mxu0 %v284_v53 }
  0x19   :  { %378 = vmatpush.msra.mxu2 %v291_v63  ;;  %294 = vmatpush.msrb.mxu3 %v293_v2 }
  0x1a   :  { %207 = vmatpush.msrb.mxu1 %v46_v8  ;;  %321 = vmatpush.msra.mxu0 %v290_v59  ;;  %v433_v59 = vsel %vm432_vm8, 1, %v654_v58 }
  0x1b   :  { %209 = vmatmul.f32.vlgmr.msrb.gmra.mxu1 %v48_v13  ;;  %398 = vmatpush.msra.mxu3 %v249_v47  ;;  %v488_v13 = vsub.f32 %v444_v57, %v712_v62  ;;  %v434_v61 = vperm.slane %v433_v59, 0 }
  0x1c   :  { %342 = vmatpush.msra.mxu1 %v249_v47  ;;  %460 = vmatpush.msrb.mxu0 %v712_v62 }
  0x1d   :  { %400 = vmatpush.msra.mxu3 %v251_v50  ;;  %v489_v17 = vand.u32 4294901760, %v488_v13  ;;  %vm435_vm9 = vcmp.eq.s32.totalorder %v434_v61, 1 }
  0x1e   :  { %344 = vmatpush.msra.mxu1 %v251_v50  ;;  %462 = vmatpush.msrb.mxu0 %v461_v20 }
  0x1f   :  { %402 = vmatpush.msra.mxu3 %v253_v54  ;;  %v490_v22 = vsub.f32 %v488_v13, %v489_v17 }
  0x20   :  { %346 = vmatpush.msra.mxu1 %v253_v54  ;;  %464 = vmatpush.msrb.mxu0 %v463_v21 }
  0x21   :  { %v491_v29 = vand.u32 4294901760, %v490_v22 }
  0x23   :  { %492 = vmatpush.msrb.mxu1 %v491_v29  ;;  %v647_v29 = vld [vmem:[%s750_s3 + $0x15] ss:$0 sm:$0xff] }
  0x8c   :  { %v54_v32 = vpop.f32.mrf.mxu0 }
  0x8d   :  { %v55_v33 = vadd.f32 %v643_v31, %v54_v32  ;;  %v501_v31 = vand.u32 4294901760, %v500_v27 }
  0x90   :  { %v95_v34 = vpop.f32.mrf.mxu1  ;;  %v152_v37 = vpop.f32.mrf.mxu3 }
  0x91   :  { %v125_v35 = vpop.f32.mrf.mxu2  ;;  %v96_v36 = vadd.f32 %v95_v34, %v55_v33  ;;  %v496_v34 = vsub.f32 %v494_v26, %v495_v30 }
  0x93   :  { %v126_v38 = vadd.f32 %v125_v35, %v96_v36  ;;  %v502_v35 = vsub.f32 %v500_v27, %v501_v31 }
  0x94   :  { %v185_v39 = vpop.f32.mrf.mxu0 }
  0x95   :  { %v153_v40 = vadd.f32 %v152_v37, %v126_v38  ;;  %v497_v38 = vand.u32 4294901760, %v496_v34 }
  0x97   :  { %v186_v41 = vadd.f32 %v185_v39, %v153_v40  ;;  %v503_v39 = vand.u32 4294901760, %v502_v35  ;;  %498 = vmatpush.msrb.mxu1 %v497_v38 }
  0x98   :  { %v210_v42 = vpop.f32.mrf.mxu1 }
  0x99   :  { %v211_v43 = vadd.f32 %v210_v42, %v186_v41  ;;  %504 = vmatpush.msrb.mxu1 %v503_v39 }
  0x9b   :  { %v218_v44 = vsel %vm217_vm1, %v211_v43, -inf }
  0x9c   :  { %219 = vmax.xlane.f32.xlu0 %v218_v44 }
 0x10f   :  { %v220_v3 = vpop.xlane.xlu0 %219 }
 0x110   :  { %v221_v4 = vsub.f32 %v211_v43, %v220_v3  ;;  %v225_v15 = vsub.f32 %v644_v14, %v220_v3 }
 0x112   :  { %v222_v5 = vmul.f32 1.442695, %v221_v4  ;;  %v226_v16 = vmul.f32 1.442695, %v225_v15 }
 0x114   :  { %648 = vpow2.f32 %v222_v5 }
 0x115   :  { %650 = vpow2.f32 %v226_v16 }
 0x11a   :  { %v715_v6 = vpop.eup %648 }
 0x11b   :  { %v230_v7 = vsel %vm228_vm3, %v715_v6, 0  ;;  %v651_v23 = vpop.eup %650 }
 0x11c   :  { %v255_v8 = vand.u32 4294901760, %v230_v7 }
 0x11e   :  { %296 = vmatmul.f32.vlgmr.msrb.gmra.mxu3 %v255_v8  ;;  %v256_v9 = vsub.f32 %v230_v7, %v255_v8 }
 0x11f   :  { %552 = vmatpush.msrb.mxu3 %v712_v62 }
 0x120   :  { %324 = vmatmul.f32.vlgmr.msra.gmra.mxu0 %v256_v9  ;;  %v257_v10 = vand.u32 4294901760, %v256_v9 }
 0x121   :  { %554 = vmatpush.msrb.mxu3 %v461_v20  ;;  %580 = vmatpush.msra.mxu0 %v489_v17 }
 0x122   :  { %350 = vmatmul.f32.vlgmr.msra.gmra.mxu1 %v257_v10  ;;  %v258_v11 = vsub.f32 %v256_v9, %v257_v10 }
 0x123   :  { %556 = vmatpush.msrb.mxu3 %v463_v21  ;;  %584 = vmatpush.msra.mxu0 %v495_v30 }
 0x124   :  { %v259_v12 = vand.u32 4294901760, %v258_v11  ;;  %608 = vmatpush.msra.mxu1 %v712_v62 }
 0x125   :  { %588 = vmatpush.msra.mxu0 %v501_v31  ;;  %v645_v31 = vld [vmem:[%s750_s3 + $0x14] ss:$0 sm:$0xff] }
 0x126   :  { %260 = vmatmul.f32.vlgmr.msrb.gmra.mxu2 %v259_v12  ;;  %404 = vmatmul.f32.vlgmr.msra.gmra.mxu3 %v255_v8 }
 0x127   :  { %525 = vmatpush.msrb.mxu2 %v488_v13  ;;  %610 = vmatpush.msra.mxu1 %v461_v20 }
 0x129   :  { %528 = vmatpush.msrb.mxu2 %v494_v26  ;;  %612 = vmatpush.msra.mxu1 %v463_v21  ;;  %v646_v26 = vld [vmem:[%s750_s3 + $0x16] ss:$0 sm:$0xff] }
 0x12b   :  { %531 = vmatpush.msrb.mxu2 %v500_v27 }
 0x12e   :  { %380 = vmatmul.f32.vlgmr.msra.gmra.mxu2 %v255_v8 }
 0x19d   :  { %v325_v33 = vpop.f32.mrf.mxu0 }
 0x19f   :  { %v351_v37 = vpop.f32.mrf.mxu1 }
 0x1a1   :  { %v297_v24 = vpop.f32.mrf.mxu3 }
 0x1a9   :  { %v261_v25 = vpop.f32.mrf.mxu2  ;;  %v405_v43 = vpop.f32.mrf.mxu3 }
 0x1aa   :  { %v262_v28 = vadd.f32 %v651_v23, %v261_v25 }
 0x1ac   :  { %v298_v32 = vadd.f32 %v297_v24, %v262_v28 }
 0x1ae   :  { %v326_v36 = vadd.f32 %v325_v33, %v298_v32 }
 0x1b0   :  { %v352_v40 = vadd.f32 %v351_v37, %v326_v36 }
 0x1b1   :  { %v381_v41 = vpop.f32.mrf.mxu2 }
 0x1b2   :  { %v382_v42 = vadd.f32 %v381_v41, %v352_v40 }
 0x1b4   :  { %v406_v44 = vadd.f32 %v405_v43, %v382_v42 }
 0x1b6   :  { %652 = vrcp.f32 %v406_v44  ;;  %v419_v48 = vand.u32 2147483648, %v406_v44  ;;  %v417_v50 = vand.u32 2147483647, %v406_v44  ;;  %vm413_vm5 = vweird.f32 %v406_v44 }
 0x1b8   :  { %v420_v53 = vor.u32 1.1754944e-38, %v419_v48  ;;  %vm418_vm7 = vcmp.eq.f32.partialorder %v417_v50, 8.507059e+37 }
 0x1bc   :  { %v653_v45 = vpop.eup %652 }
 0x1bd   :  { %v409_v46 = vmul.f32 %v653_v45, %v406_v44  ;;  %vm414_vm4 = vweird.f32 %v653_v45 }
 0x1be   :  { %vm415_vm6 = vmor %vm413_vm5, %vm414_vm4 }
 0x1bf   :  { %v410_v47 = vsub.f32 1.0, %v409_v46 }
 0x1c1   :  { %v411_v49 = vmul.f32 %v653_v45, %v410_v47 }
 0x1c3   :  { %v412_v51 = vadd.f32 %v653_v45, %v411_v49 }
 0x1c5   :  { %v416_v54 = vsel %vm415_vm6, %v653_v45, %v412_v51 }
 0x1c6   :  { %v421_v55 = vsel %vm418_vm7, %v420_v53, %v416_v54 }
 0x1c7   :  { %v422_v56 = vmul.f32 %v715_v6, %v421_v55 }
 0x1c9   :  { %v425_v57 = vsub.f32 1.0, %v422_v56  ;;  %v423_v62 = vmul.f32 %v422_v56, %v422_v56  ;;  %vm430_vm10 = vcmp.lt.f32.partialorder %v422_v56, 0.25 }
 0x1cb   :  { %v426_v60 = vmul.f32 %v425_v57, %v425_v57  ;;  %v424_v1 = vmul.f32 4.0, %v423_v62 }
 0x1cd   :  { %v427_v63 = vmul.f32 %v426_v60, %v425_v57 }
 0x1cf   :  { %v428_v0 = vmul.f32 1.7777778, %v427_v63 }
 0x1d1   :  { %v429_v2 = vsub.f32 1.0, %v428_v0 }
 0x1d3   :  { %v431_v3 = vsel %vm430_vm10, %v424_v1, %v429_v2 }
 0x1d4   :  { %v436_v4 = vsel %vm435_vm9, %v431_v3, %v422_v56 }
 0x1d5   :  { %v441_v5 = vsel %vm228_vm3, %v436_v4, 0 }
 0x1d6   :  { %v465_v7 = vand.u32 4294901760, %v441_v5 }
 0x1d8   :  { %506 = vmatmul.f32.vlgmr.msrb.gmra.mxu1 %v465_v7  ;;  %v466_v8 = vsub.f32 %v441_v5, %v465_v7 }
 0x1da   :  { %534 = vmatmul.f32.vlgmr.msrb.gmra.mxu2 %v466_v8  ;;  %v467_v6 = vand.u32 4294901760, %v466_v8 }
 0x1dc   :  { %560 = vmatmul.f32.vlgmr.msrb.gmra.mxu3 %v467_v6  ;;  %v468_v9 = vsub.f32 %v466_v8, %v467_v6 }
 0x1de   :  { %v469_v10 = vand.u32 4294901760, %v468_v9 }
 0x1e0   :  { %470 = vmatmul.f32.vlgmr.msrb.gmra.mxu0 %v469_v10  ;;  %614 = vmatmul.f32.vlgmr.msra.gmra.mxu1 %v465_v7 }
 0x1e8   :  { %590 = vmatmul.f32.vlgmr.msra.gmra.mxu0 %v465_v7 }
 0x255   :  { %v507_v11 = vpop.f32.mrf.mxu1 }
 0x25d   :  { %v471_v12 = vpop.f32.mrf.mxu0  ;;  %v535_v14 = vpop.f32.mrf.mxu2 }
 0x25e   :  { %v508_v13 = vadd.f32 %v507_v11, %v471_v12  ;;  %v615_v20 = vpop.f32.mrf.mxu1 }
 0x25f   :  { %v561_v16 = vpop.f32.mrf.mxu3 }
 0x260   :  { %v536_v15 = vadd.f32 %v535_v14, %v508_v13 }
 0x262   :  { %v562_v17 = vadd.f32 %v561_v16, %v536_v15 }
 0x265   :  { %v591_v18 = vpop.f32.mrf.mxu0 }
 0x266   :  { %v592_v19 = vadd.f32 %v591_v18, %v562_v17 }
 0x268   :  { %v616_v21 = vadd.f32 %v615_v20, %v592_v19 }
 0x26a   :  { %v623_v22 = vsub.f32 1.0, %v616_v21  ;;  %v621_v23 = vmul.f32 %v616_v21, %v616_v21  ;;  %vm627_vm11 = vcmp.lt.f32.partialorder %v616_v21, 0.1  ;;  %v630_v34 = vmul.f32 %v645_v31, %v616_v21 }
 0x26c   :  { %v624_v24 = vmul.f32 %v623_v22, %v623_v22  ;;  %v622_v27 = vmul.f32 10.0, %v621_v23 }
 0x26e   :  { %v625_v25 = vmul.f32 1.1111112, %v624_v24 }
 0x270   :  { %v626_v28 = vsub.f32 1.0, %v625_v25 }
 0x272   :  { %v628_v30 = vsel %vm627_vm11, %v622_v27, %v626_v28 }
 0x273   :  { %v632_v32 = vmul.f32 %v646_v26, %v628_v30 }
 0x275   :  { %v634_v33 = vadd.f32 %v647_v29, %v632_v32 }
 0x277   :  { %v635_v35 = vmul.f32 %v634_v33, %v623_v22 }
 0x279   :  { %v636_v36 = vadd.f32 %v635_v35, %v630_v34 }
 0x27b   :  { %637 = vst [vmem:[%s752_s4] sm:$0x3] %v636_v36 }

</bundles_post_ra>
